<compile_context>
chip_gen: v7x
topology: tpu7x:2x2x1
jax: 0.10.0
libtpu: 0.0.40
codegen_flags: <defaults>
</compile_context>

<pallas_src>
import jax
import jax.numpy as jnp
from jax.experimental import pallas as pl
from jax.experimental.pallas import tpu as pltpu


def planar_kernel(z_ref, w_ref, u_hat_ref, scal_ref, z_next_ref, ldj_ref):
    z = z_ref[...].astype(jnp.float32)        # (tb, dim)
    w = w_ref[...]                            # (1, dim) f32
    u_hat = u_hat_ref[...]                    # (1, dim) f32
    b = scal_ref[0]                           # scalar (SMEM)
    wu = scal_ref[1]                          # scalar: w · u_hat (SMEM)

    # affine = z @ w.T + b  (lane-axis reduction; deliberately not on the MXU)
    affine = jnp.sum(z * w, axis=-1, keepdims=True) + b      # (tb, 1)
    h = jnp.tanh(affine)                                     # single tanh (EUP)

    # z_next = z + u_hat * tanh(affine)
    z_next_ref[...] = (z + u_hat * h).astype(z_next_ref.dtype)

    # LDJ: psi @ u_hat.T == (1 - h^2) * (w · u_hat)  — scalar multiply, reuse h
    h_prime = 1.0 - h * h
    ldj = -jnp.log(jnp.abs(h_prime * wu + 1.0) + 1e-08)      # (tb, 1)
    ldj_ref[...] = ldj.astype(ldj_ref.dtype)


def _pick_tb(B, row_bytes):
    """Largest batch tile that divides B, keeps a multi-step grid (pipelining,
    both TensorCores busy on v7x) and stays well inside the scoped VMEM limit."""
    budget = 2 * 1024 * 1024  # ~2 MiB z tile -> ~8 MiB with in/out double buffers
    for cand in (1024, 512, 256, 128, 64, 32, 16, 8):
        if B % cand == 0 and B // cand >= 2 and cand * row_bytes <= budget:
            return cand
    return B  # full-array tile: always a legal block shape


def planar_transform(z, u, w, b, *, tb=None):
    B, dim = z.shape

    # ---- grid-invariant parameter math, hoisted out of the kernel ----------
    u32 = u.astype(jnp.float32)
    w32 = w.astype(jnp.float32)
    u_dot_w = jnp.sum(u32 * w32)
    w_hat = w32 / jnp.sqrt(jnp.sum(w32 * w32))
    m_val = -1.0 + jnp.log1p(jnp.exp(u_dot_w))          # m(x) as in the module
    u_hat = (m_val - u_dot_w) * w_hat + u32             # (1, dim)
    wu = jnp.sum(w32 * u_hat)                           # scalar: w · u_hat
    scalars = jnp.stack([jnp.reshape(b, ()).astype(jnp.float32), wu])  # (2,)

    if tb is None:
        tb = _pick_tb(B, dim * 4)  # f32 rows inside the kernel
    assert B % tb == 0

    grid = (B // tb,)
    out_shape = (
        jax.ShapeDtypeStruct((B, dim), z.dtype),
        jax.ShapeDtypeStruct((B, 1), jnp.float32),
    )
    z_next, ldj = pl.pallas_call(
        planar_kernel,
        out_shape=out_shape,
        grid_spec=pltpu.PrefetchScalarGridSpec(
            num_scalar_prefetch=0,
            grid=grid,
            in_specs=[
                pl.BlockSpec((tb, dim), lambda i: (i, 0)),          # z tile
                pl.BlockSpec((1, dim), lambda i: (0, 0)),           # w (bcast)
                pl.BlockSpec((1, dim), lambda i: (0, 0)),           # u_hat (bcast)
                pl.BlockSpec(memory_space=pltpu.MemorySpace.SMEM),  # [b, w·u_hat]
            ],
            out_specs=[
                pl.BlockSpec((tb, dim), lambda i: (i, 0)),          # z_next tile
                pl.BlockSpec((tb, 1), lambda i: (i, 0)),            # LDJ tile
            ],
        ),
        compiler_params=pltpu.CompilerParams(
            dimension_semantics=("parallel",),
        ),
    )(z, w32, u_hat, scalars)

    return z_next, ldj


def planar_transform_ref(z, u, w, b):
    """Pure-JAX reference mirroring the PyTorch forward."""
    u_dot_w = jnp.sum(u * w)
    w_hat = w / jnp.sqrt(jnp.sum(w * w))
    u_hat = (-1.0 + jnp.log(1.0 + jnp.exp(u_dot_w)) - u_dot_w) * w_hat + u
    affine = z @ w.T + b
    z_next = z + u_hat * jnp.tanh(affine)
    psi = (1.0 - jnp.tanh(affine) ** 2) * w
    ldj = -jnp.log(jnp.abs(psi @ u_hat.T + 1.0) + 1e-08)
    return z_next, ldj


if __name__ == "__main__":
    dim = 20   # module default
    B = 8      # small batch

    key = jax.random.PRNGKey(0)
    k_u, k_w, k_b, k_z = jax.random.split(key, 4)

    # Deterministic parameter init matching the module's __init__ shapes.
    u = (jax.random.normal(k_u, (1, dim)) * 0.01).astype(jnp.float32)
    w = (jax.random.normal(k_w, (1, dim)) * 0.01).astype(jnp.float32)
    b = (jax.random.normal(k_b, ()) * 0.01).astype(jnp.float32)

    z = jax.random.normal(k_z, (B, dim), dtype=jnp.float32)

    z_next, ldj = planar_transform(z, u, w, b)
    jax.block_until_ready((z_next, ldj))

    z_next_ref, ldj_ref = planar_transform_ref(z, u, w, b)
    assert z_next.shape == (B, dim) and ldj.shape == (B, 1)
    assert jnp.allclose(z_next, z_next_ref, atol=1e-5, rtol=1e-5)
    assert jnp.allclose(ldj, ldj_ref, atol=1e-5, rtol=1e-5)

    print("KERNEL_OK")
</pallas_src>

<mosaic_0001>
module attributes {stable_mosaic.version = 11 : i64} {
  func.func @planar_kernel(%arg0: i32, %arg1: memref<8x20xf32, #tpu.memory_space<vmem>>, %arg2: memref<1x20xf32, #tpu.memory_space<vmem>>, %arg3: memref<1x20xf32, #tpu.memory_space<vmem>>, %arg4: memref<2xf32, #tpu.memory_space<smem>>, %arg5: memref<8x20xf32, #tpu.memory_space<vmem>>, %arg6: memref<8x1xf32, #tpu.memory_space<vmem>>) attributes {dimension_semantics = [#tpu.dimension_semantics<parallel>], iteration_bounds = array<i64: 1>, scalar_prefetch = 0 : i64, scratch_operands = 0 : i64, tpu.core_type = #tpu.core_type<tc>, window_params = [{transform_indices = @transform_0, window_bounds = array<i64: 8, 20>}, {pipeline_mode = #tpu.pipeline_mode<synchronous>, transform_indices = @transform_1, window_bounds = array<i64: 1, 20>}, {pipeline_mode = #tpu.pipeline_mode<synchronous>, transform_indices = @transform_2, window_bounds = array<i64: 1, 20>}, {transform_indices = @transform_3, window_bounds = array<i64: 2>}, {transform_indices = @transform_4, window_bounds = array<i64: 8, 20>}, {transform_indices = @transform_5, window_bounds = array<i64: 8, 1>}]} {
    %c0 = arith.constant 0 : index
    %c0_0 = arith.constant 0 : index
    %0 = vector.load %arg1[%c0, %c0_0] : memref<8x20xf32, #tpu.memory_space<vmem>>, vector<8x20xf32>
    %c0_1 = arith.constant 0 : index
    %c0_2 = arith.constant 0 : index
    %1 = vector.load %arg2[%c0_1, %c0_2] : memref<1x20xf32, #tpu.memory_space<vmem>>, vector<1x20xf32>
    %c0_3 = arith.constant 0 : index
    %c0_4 = arith.constant 0 : index
    %2 = vector.load %arg3[%c0_3, %c0_4] : memref<1x20xf32, #tpu.memory_space<vmem>>, vector<1x20xf32>
    %c0_5 = arith.constant 0 : index
    %3 = memref.load %arg4[%c0_5] : memref<2xf32, #tpu.memory_space<smem>>
    %c1 = arith.constant 1 : index
    %4 = memref.load %arg4[%c1] : memref<2xf32, #tpu.memory_space<smem>>
    %5 = vector.broadcast %1 : vector<1x20xf32> to vector<8x20xf32>
    %6 = arith.mulf %0, %5 : vector<8x20xf32>
    %cst = arith.constant dense<0.000000e+00> : vector<8xf32>
    %7 = vector.multi_reduction <add>, %6, %cst [1] : vector<8x20xf32> to vector<8xf32>
    %8 = vector.shape_cast %7 : vector<8xf32> to vector<8x1xf32>
    %9 = vector.broadcast %3 : f32 to vector<8x1xf32>
    %10 = arith.addf %8, %9 : vector<8x1xf32>
    %11 = math.tanh %10 : vector<8x1xf32>
    %12 = vector.broadcast %2 : vector<1x20xf32> to vector<8x20xf32>
    %13 = vector.broadcast %11 : vector<8x1xf32> to vector<8x20xf32>
    %14 = arith.mulf %12, %13 : vector<8x20xf32>
    %15 = arith.addf %0, %14 : vector<8x20xf32>
    %c0_6 = arith.constant 0 : index
    %c0_7 = arith.constant 0 : index
    %16 = vector.load %arg5[%c0_6, %c0_7] : memref<8x20xf32, #tpu.memory_space<vmem>>, vector<8x20xf32>
    tpu.vector_store %arg5[%c0_6, %c0_7], %15 {strides = array<i32>} : memref<8x20xf32, #tpu.memory_space<vmem>>, vector<8x20xf32>,
    %17 = arith.mulf %11, %11 : vector<8x1xf32>
    %cst_8 = arith.constant 1.000000e+00 : f32
    %18 = vector.broadcast %cst_8 : f32 to vector<8x1xf32>
    %19 = arith.subf %18, %17 : vector<8x1xf32>
    %20 = vector.broadcast %4 : f32 to vector<8x1xf32>
    %21 = arith.mulf %19, %20 : vector<8x1xf32>
    %cst_9 = arith.constant 1.000000e+00 : f32
    %22 = vector.broadcast %cst_9 : f32 to vector<8x1xf32>
    %23 = arith.addf %21, %22 : vector<8x1xf32>
    %24 = math.absf %23 : vector<8x1xf32>
    %cst_10 = arith.constant 9.99999993E-9 : f32
    %25 = vector.broadcast %cst_10 : f32 to vector<8x1xf32>
    %26 = arith.addf %24, %25 : vector<8x1xf32>
    %27 = math.log %26 : vector<8x1xf32>
    %cst_11 = arith.constant 0.000000e+00 : f32
    %28 = vector.broadcast %cst_11 : f32 to vector<8x1xf32>
    %29 = arith.subf %28, %27 : vector<8x1xf32>
    %c0_12 = arith.constant 0 : index
    %c0_13 = arith.constant 0 : index
    %30 = vector.load %arg6[%c0_12, %c0_13] : memref<8x1xf32, #tpu.memory_space<vmem>>, vector<8x1xf32>
    tpu.vector_store %arg6[%c0_12, %c0_13], %29 {strides = array<i32>} : memref<8x1xf32, #tpu.memory_space<vmem>>, vector<8x1xf32>,
    return
  }
  func.func @transform_0(%arg0: i32) -> (i32, i32) {
    %c0_i32 = arith.constant 0 : i32
    %c0_i32_0 = arith.constant 0 : i32
    return %arg0, %c0_i32 : i32, i32
  }
  func.func @transform_1(%arg0: i32) -> (i32, i32) {
    %c0_i32 = arith.constant 0 : i32
    %c0_i32_0 = arith.constant 0 : i32
    %c0_i32_1 = arith.constant 0 : i32
    return %c0_i32, %c0_i32_0 : i32, i32
  }
  func.func @transform_2(%arg0: i32) -> (i32, i32) {
    %c0_i32 = arith.constant 0 : i32
    %c0_i32_0 = arith.constant 0 : i32
    %c0_i32_1 = arith.constant 0 : i32
    return %c0_i32, %c0_i32_0 : i32, i32
  }
  func.func @transform_3(%arg0: i32) -> i32 {
    %c0_i32 = arith.constant 0 : i32
    %c0_i32_0 = arith.constant 0 : i32
    return %c0_i32 : i32
  }
  func.func @transform_4(%arg0: i32) -> (i32, i32) {
    %c0_i32 = arith.constant 0 : i32
    %c0_i32_0 = arith.constant 0 : i32
    return %arg0, %c0_i32 : i32, i32
  }
  func.func @transform_5(%arg0: i32) -> (i32, i32) {
    %c0_i32 = arith.constant 0 : i32
    %c0_i32_0 = arith.constant 0 : i32
    return %arg0, %c0_i32 : i32, i32
  }
}

</mosaic_0001>

<bundles_post_ra>
// kernel: tpu_custom_call.1
= control target key start
LH: loop header
LB: loop body
LE: loop exit
PB: predicated region body
PF: predicated region fallthrough
CT: control target
= control target key end

     0   :  { %11 = vsyncpa [#allocation3], 0  ;;  %s248_s0 = inlined_call_operand.hbm [shape: f32[8,20], index: 0, kind: input, shape index: {}]   ;;  %s249_s1 = inlined_call_operand.vmem [shape: f32[1,20], index: 1, kind: input, shape index: {}]   ;;  %s250_s2 = inlined_call_operand.vmem [shape: f32[1,20], index: 2, kind: input, shape index: {}]   ;;  %s251_s3 = inlined_call_operand.vmem [shape: f32[2], index: 3, kind: input, shape index: {}]   ;;  %s252_s4 = inlined_call_operand.hbm [shape: f32[8,20], index: 4, kind: output, shape index: {0}]   ;;  %s253_s5 = inlined_call_operand.vmem [shape: f32[8,1], index: 5, kind: output, shape index: {1}]  }
   0x1   :  { %12 = vsyncpa [#allocation5], 0 }
   0x2   :  { %13 = vsyncpa [#allocation4], 0  ;;  %s34_s20 = sshll.u32 %s251_s3, 4  ;;  %s177_s21 = smov [#allocation2]   ;;  %s35_s20 = int_to_ptr.vmem [resolvable:$true] %s34_s20 }
   0x3   :  { %s20_s22 = sshll.u32 %s177_s21, 4  ;;  %s115_s25 = scalar_lea.hbm %s248_s0, 128  ;;  %s21_s22 = int_to_ptr.vmem [resolvable:$true] %s20_s22 }
   0x4   :  { %p116_p0 = scmp.ne.s32.totalorder %s248_s0, %s115_s25  ;;  %p119_p1 = scmp.lt.u32.totalorder %s115_s25, %s248_s0 }
   0x6   :  { %p121_p2 = pnand %p119_p1, %p116_p0 }
   0x8   :  { %124 = shalt.err (!%p121_p2)
}
   0x9   :  { %s125_s30 = scalar_lea.vmem %s21_s22, 128  ;;  %p130_p4 = scmp.lt.s32.totalorder %s21_s22, %s21_s22 }
   0xa   :  { %p126_p3 = scmp.ne.s32.totalorder %s21_s22, %s125_s30  ;;  %p131_p5 = scmp.lt.s32.totalorder %s125_s30, %s125_s30 }
   0xc   :  { %p132_p6 = por %p131_p5, %p130_p4 }
   0xe   :  { %p133_p7 = pnand %p132_p6, %p126_p3 }
  0x10   :  { %136 = shalt.err (!%p133_p7)
}
  0x11   :  { %23 = dma.hbm_to_vmem [thread:$0]  %s248_s0, 128, %s21_s22, [#allocation3]  }
  0x12   :  { %s137_s7 = scalar_lea.vmem %s35_s20, 16  ;;  %p142_p9 = scmp.lt.s32.totalorder %s35_s20, %s35_s20 }
  0x13   :  { %p138_p8 = scmp.ne.s32.totalorder %s35_s20, %s137_s7  ;;  %p143_p10 = scmp.lt.s32.totalorder %s137_s7, %s137_s7 }
  0x15   :  { %p144_p11 = por %p143_p10, %p142_p9 }
  0x17   :  { %p145_p12 = pnand %p144_p11, %p138_p8 }
  0x19   :  { %148 = shalt.err (!%p145_p12)
}
  0x1a   :  { %s178_s8 = smov [#allocation6]  }
  0x1b   :  { %37 = dma.vmem_to_smem %s35_s20, 16, %s178_s8, [#allocation5]  }
  0x1c   :  { %171 = dma.done.wait [#allocation3], 128  }
  0x1d   :  { %172 = vsyncadd [#allocation3], 4294967168 }
  0x1e   :  { %173 = dma.done.wait [#allocation5], 16  }
  0x1f   :  { %174 = vsyncadd [#allocation5], 4294967280 }
  0x20   :  { %44 = sfence }
  0x21   :  { %v45_v0 = vld [vmem:[#allocation2] sm:$0xff]  ;;  %vm57_vm0 = vcmask 162816   ;;  %s48_s0 = sld [smem:[#allocation6]]  ;;  %s105_s11 = sld [smem:[#allocation6 + $0x1]] }
  0x22   :  { %v106_v1 = vld [vmem:[%s249_s1] ss:$0 sm:$0xff]  ;;  %s179_s14 = smov [#allocation7]  }
  0x23   :  { %v56_v2 = vmul.f32 %v106_v1, %v45_v0  ;;  %v107_v7 = vld [vmem:[%s250_s2] ss:$0 sm:$0xff]  ;;  %s91_s15 = sshll.u32 %s179_s14, 4  ;;  %s92_s15 = int_to_ptr.vmem [resolvable:$true] %s91_s15 }
  0x24   :  { %s149_s1 = scalar_lea.vmem %s92_s15, 128  ;;  %p154_p0 = scmp.lt.s32.totalorder %s92_s15, %s92_s15 }
  0x25   :  { %v58_v3 = vsel %vm57_vm0, %v56_v2, 0.0  ;;  %p150_p13 = scmp.ne.s32.totalorder %s92_s15, %s149_s1  ;;  %p155_p1 = scmp.lt.s32.totalorder %s149_s1, %s149_s1 }
  0x26   :  { %59 = vadd.xlane.f32.xlu0 %v58_v3 }
  0x27   :  { %v61_v4 = vstv %s48_s0  ;;  %v75_v11 = vstv %s105_s11  ;;  %p156_p2 = por %p155_p1, %p154_p0 }
  0x29   :  { %p157_p3 = pnand %p156_p2, %p150_p13 }
  0xb3   :  { %v60_v5 = vpop.xlane.xlu0 %59 }
  0xb4   :  { %v62_v6 = vadd.f32 %v61_v4, %v60_v5 }
  0xb6   :  { %111 = vtanh.f32 %v62_v6 }
  0xc0   :  { %v112_v8 = vpop.eup %111 }
  0xc1   :  { %v73_v9 = vmul.f32 %v112_v8, %v112_v8  ;;  %v70_v10 = vmul.f32 %v112_v8, %v107_v7 }
  0xc3   :  { %v74_v12 = vsub.f32 1.0, %v73_v9  ;;  %v71_v13 = vadd.f32 %v70_v10, %v45_v0 }
  0xc5   :  { %v76_v14 = vmul.f32 %v75_v11, %v74_v12  ;;  %72 = vst.msk [vmem:[#allocation7] sm:$0xff] %vm57_vm0, %v71_v13 }
  0xc6   :  { %160 = shalt.err (!%p157_p3)
}
  0xc7   :  { %s161_s17 = scalar_lea.hbm %s252_s4, 128 }
  0xc8   :  { %p162_p4 = scmp.ne.s32.totalorder %s252_s4, %s161_s17  ;;  %p165_p5 = scmp.lt.u32.totalorder %s161_s17, %s252_s4 }
  0xca   :  { %p167_p6 = pnand %p165_p5, %p162_p4 }
  0xcc   :  { %170 = shalt.err (!%p167_p6)
}
  0xcd   :  { %94 = dma.vmem_to_hbm [thread:$0]  %s92_s15, 128, %s252_s4, [#allocation4]   ;;  %v77_v15 = vadd.f32 1.0, %v76_v14  ;;  %vm83_vm1 = vcmask 7168  }
  0xcf   :  { %v78_v16 = vand.u32 2147483647, %v77_v15 }
  0xd1   :  { %v79_v17 = vadd.f32 1e-08, %v78_v16 }
  0xd3   :  { %113 = vlog2.f32 %v79_v17 }
  0xdd   :  { %v114_v18 = vpop.eup %113 }
  0xde   :  { %v81_v19 = vmul.f32 0.6931472, %v114_v18 }
  0xe0   :  { %v82_v20 = vsub.f32 0.0, %v81_v19 }
  0xe2   :  { %84 = vst.msk [vmem:[%s253_s5] sm:$0xff] %vm83_vm1, %v82_v20 }
  0xe3   :  { %175 = dma.done.wait [#allocation4], 128  }
  0xe4   :  { %176 = vsyncadd [#allocation4], 4294967168 }
  0xe5   :  { %102 = vsyncpa [#allocation3], 1 }
  0xe6   :  { %103 = vsyncpa [#allocation4], 1 }
  0xe7   :  { %104 = vsyncpa [#allocation5], 1 }

</bundles_post_ra>
